<compile_context>
chip_gen: v6e
topology: v6e:2x2x1
jax: 0.10.0
libtpu: 0.0.40
codegen_flags: <defaults>
</compile_context>

<pallas_src>
import functools

import jax
import jax.numpy as jnp
from jax.experimental import pallas as pl
from jax.experimental.pallas import tpu as pltpu


# ---------------------------------------------------------------------------
# Kernel bodies
# ---------------------------------------------------------------------------

def _apply_head(scal_ref, w_ref, sal, out_ref, *, th, out_c):
    """Shared tail: per-output-channel 1x1 conv + ReLU/Threshold + 1-wf*sigmoid.

    scal_ref : SMEM (3,)   -> [scale/2, 1 - wf/2, wf/2]
    w_ref    : SMEM (outC,) 1x1 conv weights
    sal      : f32 value, (TB, 1, S) weak-saliency map for this block
    out_ref  : VMEM (TB, outC, S)
    """
    half_scale = scal_ref[0]
    s0 = scal_ref[1]
    s1 = scal_ref[2]

    def emit(o):
        w_o = w_ref[o]
        f = w_o * sal                                   # (TB, 1, S) f32
        if th < 0.0:
            # nn.ReLU only matters when the threshold would pass negatives.
            f = jnp.maximum(f, 0.0)
        f = jnp.where(f > th, f, 0.0)                   # ReLU + Threshold (th >= 0)
        # 1 - wf*sigmoid(scale*f) == (1 - wf/2) - (wf/2)*tanh((scale/2)*f)
        y = s0 - s1 * jnp.tanh(half_scale * f)
        out_ref[:, pl.ds(o, 1), :] = y.astype(out_ref.dtype)

    if out_c <= 8:
        for o in range(out_c):                          # static unroll for tiny outC
            emit(o)
    else:
        def body(o, carry):
            emit(o)
            return carry
        jax.lax.fori_loop(0, out_c, body, 0)


def _fused_kernel(scal_ref, w_ref, x_ref, out_ref, *, inv_hw_c, th, out_c):
    """Single-pass kernel: the whole (padded) spatial extent is VMEM-resident.

    x_ref : VMEM (TB, C, HWp) in the input dtype (bf16 stays bf16 on the MXU).
    """
    x = x_ref[...]
    tb = x.shape[0]
    hwp = x.shape[-1]
    ones = jnp.ones((tb, 1, hwp), dtype=x.dtype)
    # Per-channel spatial sums on the MXU: (TB,1,HWp) . (TB,C,HWp)^T -> (TB,1,C)
    asum = jnp.einsum("bqs,bcs->bqc", ones, x, preferred_element_type=jnp.float32)
    a = (asum * inv_hw_c).astype(x.dtype)               # fold 1/(H*W*C) once
    # Channel contraction on the MXU: (TB,1,C) . (TB,C,HWp) -> (TB,1,HWp)
    sal = jnp.einsum("bqc,bcs->bqs", a, x, preferred_element_type=jnp.float32)
    _apply_head(scal_ref, w_ref, sal, out_ref, th=th, out_c=out_c)


def _alpha_pass_kernel(x_ref, asum_ref):
    """Tiled path, pass 1: accumulate raw per-channel spatial sums over HW tiles.

    x_ref    : VMEM (1, C, TS)
    asum_ref : VMEM (1, 8, C) f32; row 0 holds the sums (8 rows for tiling only).
    """
    @pl.when(pl.program_id(1) == 0)
    def _init():
        asum_ref[...] = jnp.zeros_like(asum_ref)

    x = x_ref[...]
    ones = jnp.ones((1, 1, x.shape[-1]), dtype=x.dtype)
    part = jnp.einsum("bqs,bcs->bqc", ones, x, preferred_element_type=jnp.float32)
    asum_ref[:, 0:1, :] += part


def _apply_pass_kernel(scal_ref, w_ref, asum_ref, x_ref, out_ref, *,
                       inv_hw_c, th, out_c):
    """Tiled path, pass 2: re-sweep the HW tiles of x and apply the head."""
    x = x_ref[...]                                        # (1, C, TS)
    a = (asum_ref[:, 0:1, :] * inv_hw_c).astype(x.dtype)  # (1, 1, C)
    sal = jnp.einsum("bqc,bcs->bqs", a, x, preferred_element_type=jnp.float32)
    _apply_head(scal_ref, w_ref, sal, out_ref, th=th, out_c=out_c)


# ---------------------------------------------------------------------------
# Tiling / wrapper
# ---------------------------------------------------------------------------

def _vmem_budget_and_cores():
    """Generation-aware VMEM budget, compiler VMEM limit and TensorCore count."""
    try:
        vmem_cap = int(pltpu.get_tpu_info().vmem_capacity_bytes)
    except Exception:
        vmem_cap = 64 << 20            # conservative (v7x-sized) fallback
    kind = ""
    try:
        kind = jax.devices()[0].device_kind.lower()
    except Exception:
        pass
    # v5e / v6e expose a single TensorCore per device; everything else is treated
    # as megacore (>=2 TCs) so the 'parallel' batch axis keeps >=2 grid steps.
    single_tc = any(t in kind for t in
                    ("v5e", "v5 lite", "v5lite", "v6e", "v6 lite", "v6lite"))
    n_tc = 1 if single_tc else 2
    budget = min((vmem_cap * 7) // 10, 96 << 20)
    vmem_limit = max(32 << 20, min(vmem_cap - (16 << 20), budget + (8 << 20)))
    return budget, int(vmem_limit), n_tc


def weak_saliency_mechanism(x, conv_weight, scale_layer, wf, threshold=0.01,
                            *, force_tiled=False, tile_hint=None):
    """weakSaliencyMechanism forward.

    x           : (B, C, H, W)
    conv_weight : (outC, 1, 1, 1)   Conv2d(1, outC, 1, bias=False) weight
    scale_layer : scalar (or shape-(1,)) parameter
    wf          : scalar (or shape-(1,)) parameter
    force_tiled : force the two-pass HW-tiled path (testing / v7x tuning)
    tile_hint   : optional cap (in spatial elements) on the HW tile of the
                  tiled path (testing / tuning)

    Note: the output dtype follows the input dtype (bf16 in -> bf16 out); all
    internal math is f32 (MXU accumulation / VPU), unlike the f32-only PyTorch
    module.
    """
    B, C, H, W = x.shape
    out_c = int(conv_weight.shape[0])
    HW = H * W
    HWp = int(pl.cdiv(HW, 128)) * 128          # lane-dense last dim
    out_dtype = x.dtype

    x_flat = x.reshape(B, C, HW)
    if HWp != HW:
        # Zero padding is safe: padded lanes contribute 0 to alpha/sal and are
        # sliced off below; 1/(H*W) below uses the true spatial size.
        x_flat = jnp.pad(x_flat, ((0, 0), (0, 0), (0, HWp - HW)))

    inv_hw_c = 1.0 / (float(HW) * float(C))
    th = float(threshold)

    scale = jnp.asarray(scale_layer, jnp.float32).reshape(())
    wf_v = jnp.asarray(wf, jnp.float32).reshape(())
    # Hoisted scalar algebra: out = s0 - s1 * tanh(half_scale * f)
    scalars = jnp.stack([0.5 * scale, 1.0 - 0.5 * wf_v, 0.5 * wf_v])
    w_vec = conv_weight.reshape(out_c).astype(jnp.float32)

    in_b = jnp.dtype(x.dtype).itemsize
    out_b = jnp.dtype(out_dtype).itemsize
    budget, vmem_limit, n_tc = _vmem_budget_and_cores()

    # VMEM bytes per batch element for the fused path: double-buffered x / out
    # blocks plus the f32 working set (sal, f, tanh/store temps, ones splat).
    per_elem = HWp * (2 * C * in_b + 2 * out_c * out_b + in_b + 32)
    fixed = 1 << 20
    tb_cap = B if n_tc == 1 else max(1, B // n_tc)   # >=2 steps only on megacore
    tb = 0
    for t in range(tb_cap, 0, -1):
        if B % t == 0 and t * per_elem + fixed <= budget:
            tb = t
            break

    if tb > 0 and not force_tiled:
        # ------------------ single-pass, batch-tiled path ------------------
        kernel = functools.partial(_fused_kernel, inv_hw_c=inv_hw_c, th=th,
                                   out_c=out_c)
        out_flat = pl.pallas_call(
            kernel,
            out_shape=jax.ShapeDtypeStruct((B, out_c, HWp), out_dtype),
            grid_spec=pltpu.PrefetchScalarGridSpec(
                num_scalar_prefetch=0,
                grid=(B // tb,),
                in_specs=[
                    pl.BlockSpec(memory_space=pltpu.MemorySpace.SMEM),  # scalars
                    pl.BlockSpec(memory_space=pltpu.MemorySpace.SMEM),  # conv w
                    pl.BlockSpec((tb, C, HWp), lambda b: (b, 0, 0)),    # x
                ],
                out_specs=pl.BlockSpec((tb, out_c, HWp), lambda b: (b, 0, 0)),
            ),
            compiler_params=pltpu.CompilerParams(
                dimension_semantics=("parallel",),
                vmem_limit_bytes=vmem_limit,
            ),
        )(scalars, w_vec, x_flat)
    else:
        # ------------- two-pass HW-tiled fallback (large C*H*W) -------------
        per_lane = 2 * C * in_b + 2 * out_c * out_b + in_b + 32
        n128 = HWp // 128
        max_128 = n128 if tile_hint is None else max(1, min(n128, int(tile_hint) // 128))
        ts = 128
        for d in range(max_128, 0, -1):
            if n128 % d == 0 and d * 128 * per_lane + fixed <= budget:
                ts = d * 128
                break
        # TODO(synk): if even a (1, C, 128) tile overflows the VMEM budget
        # (very large C), add channel tiling to both passes.
        n_s = HWp // ts

        # Pass 1: raw per-channel spatial sums, accumulated across HW tiles.
        asum = pl.pallas_call(
            _alpha_pass_kernel,
            out_shape=jax.ShapeDtypeStruct((B, 8, C), jnp.float32),
            grid_spec=pltpu.PrefetchScalarGridSpec(
                num_scalar_prefetch=0,
                grid=(B, n_s),
                in_specs=[pl.BlockSpec((1, C, ts), lambda b, s: (b, 0, s))],
                out_specs=pl.BlockSpec((1, 8, C), lambda b, s: (b, 0, 0)),
            ),
            compiler_params=pltpu.CompilerParams(
                dimension_semantics=("parallel", "arbitrary"),
                vmem_limit_bytes=vmem_limit,
            ),
        )(x_flat)

        # Pass 2: re-sweep x tiles, apply conv weight / threshold / sigmoid head.
        kernel2 = functools.partial(_apply_pass_kernel, inv_hw_c=inv_hw_c, th=th,
                                    out_c=out_c)
        out_flat = pl.pallas_call(
            kernel2,
            out_shape=jax.ShapeDtypeStruct((B, out_c, HWp), out_dtype),
            grid_spec=pltpu.PrefetchScalarGridSpec(
                num_scalar_prefetch=0,
                grid=(B, n_s),
                in_specs=[
                    pl.BlockSpec(memory_space=pltpu.MemorySpace.SMEM),  # scalars
                    pl.BlockSpec(memory_space=pltpu.MemorySpace.SMEM),  # conv w
                    pl.BlockSpec((1, 8, C), lambda b, s: (b, 0, 0)),    # alpha sums
                    pl.BlockSpec((1, C, ts), lambda b, s: (b, 0, s)),   # x
                ],
                out_specs=pl.BlockSpec((1, out_c, ts), lambda b, s: (b, 0, s)),
            ),
            compiler_params=pltpu.CompilerParams(
                dimension_semantics=("parallel", "arbitrary"),
                vmem_limit_bytes=vmem_limit,
            ),
        )(scalars, w_vec, asum, x_flat)

    if HWp != HW:
        out_flat = out_flat[..., :HW]
    return out_flat.reshape(B, out_c, H, W)


# ---------------------------------------------------------------------------
# Pure-JAX reference + self-test
# ---------------------------------------------------------------------------

def _reference(x, conv_weight, scale_layer, wf, threshold=0.01):
    """Pure-JAX re-implementation of the PyTorch forward for validation."""
    H, W = x.shape[2], x.shape[3]
    xf = x.astype(jnp.float32)
    alpha = jnp.sum(xf, axis=(2, 3), keepdims=True) / (H * W)         # (B,C,1,1)
    sal = jnp.sum(xf * alpha, axis=1, keepdims=True) / x.shape[1]     # (B,1,H,W)
    w = conv_weight.reshape(1, -1, 1, 1).astype(jnp.float32)          # (1,outC,1,1)
    f = w * sal
    f = jnp.maximum(f, 0.0)
    f = jnp.where(f > threshold, f, 0.0)
    return 1.0 - wf * jax.nn.sigmoid(scale_layer * f)


if __name__ == "__main__":
    key = jax.random.PRNGKey(0)
    kx1, kx2, kx3, kw = jax.random.split(key, 4)

    out_c = 4
    # Conv2d(1, outC, 1, bias=False) weight shape: (outC, 1, 1, 1)
    conv_weight = jax.random.normal(kw, (out_c, 1, 1, 1), dtype=jnp.float32) * 0.5
    scale_layer = jnp.array(1.0, dtype=jnp.float32)   # nn.Parameter([1.0])
    wf = jnp.array(1.0, dtype=jnp.float32)            # nn.Parameter([1.0])

    def check(out, ref):
        assert out.shape == ref.shape, (out.shape, ref.shape)
        # MXU-based f32 reductions (multi-pass) vs VPU reference: allow a
        # slightly looser tolerance than pure elementwise f32.
        err = float(jnp.max(jnp.abs(out.astype(jnp.float32) - ref)))
        assert err < 5e-4, err

    # 1) Primary small shape (fused single-pass path, H*W already lane-aligned).
    x1 = jax.random.normal(kx1, (2, 4, 16, 16), dtype=jnp.float32)
    out1 = jax.block_until_ready(
        weak_saliency_mechanism(x1, conv_weight, scale_layer, wf, threshold=0.01))
    check(out1, _reference(x1, conv_weight, scale_layer, wf, threshold=0.01))

    # 2) Batched + non-128-multiple spatial size (exercises zero padding, TB > 1).
    x2 = jax.random.normal(kx2, (4, 4, 13, 13), dtype=jnp.float32)
    out2 = jax.block_until_ready(
        weak_saliency_mechanism(x2, conv_weight, scale_layer, wf, threshold=0.01))
    check(out2, _reference(x2, conv_weight, scale_layer, wf, threshold=0.01))

    # 3) Force the two-pass HW-tiled fallback (the v7x large-feature-map path).
    x3 = jax.random.normal(kx3, (2, 4, 16, 16), dtype=jnp.float32)
    out3 = jax.block_until_ready(
        weak_saliency_mechanism(x3, conv_weight, scale_layer, wf, threshold=0.01,
                                force_tiled=True, tile_hint=128))
    check(out3, _reference(x3, conv_weight, scale_layer, wf, threshold=0.01))

    print("KERNEL_OK")
</pallas_src>

<mosaic_0001>
module attributes {stable_mosaic.version = 11 : i64} {
  func.func @_fused_kernel(%arg0: i32, %arg1: memref<3xf32, #tpu.memory_space<smem>>, %arg2: memref<4xf32, #tpu.memory_space<smem>>, %arg3: memref<1x4x256xf32, #tpu.memory_space<vmem>>, %arg4: memref<1x4x256xf32, #tpu.memory_space<vmem>>) attributes {dimension_semantics = [#tpu.dimension_semantics<parallel>], iteration_bounds = array<i64: 2>, scalar_prefetch = 0 : i64, scratch_operands = 0 : i64, tpu.core_type = #tpu.core_type<tc>, window_params = [{transform_indices = @transform_0, window_bounds = array<i64: 3>}, {transform_indices = @transform_1, window_bounds = array<i64: 4>}, {transform_indices = @transform_2, window_bounds = array<i64: 1, 4, 256>}, {transform_indices = @transform_3, window_bounds = array<i64: 1, 4, 256>}]} {
    %c0 = arith.constant 0 : index
    %c0_0 = arith.constant 0 : index
    %c0_1 = arith.constant 0 : index
    %0 = vector.load %arg3[%c0, %c0_0, %c0_1] : memref<1x4x256xf32, #tpu.memory_space<vmem>>, vector<1x4x256xf32>
    %cst = arith.constant 1.000000e+00 : f32
    %1 = vector.broadcast %cst : f32 to vector<1x1x256xf32>
    "tpu.trace_start"() <{level = 10 : i32, message = "bqs,bcs->bqc"}> : () -> ()
    %cst_2 = arith.constant dense<0.000000e+00> : vector<1x1x4xf32>
    %2 = tpu.matmul %1, %0, %cst_2 {dimension_numbers = #tpu.dot_dimension_numbers<[2], [2], [1], [1], [0, 0, 0, 1, 1, 1], [0], [0]>} : vector<1x1x256xf32>, vector<1x4x256xf32>, vector<1x1x4xf32> -> vector<1x1x4xf32>
    "tpu.trace_stop"() : () -> ()
    %cst_3 = arith.constant 9.765625E-4 : f32
    %3 = vector.broadcast %cst_3 : f32 to vector<1x1x4xf32>
    %4 = arith.mulf %2, %3 : vector<1x1x4xf32>
    "tpu.trace_start"() <{level = 10 : i32, message = "bqc,bcs->bqs"}> : () -> ()
    %cst_4 = arith.constant dense<0.000000e+00> : vector<1x1x256xf32>
    %5 = tpu.matmul %4, %0, %cst_4 {dimension_numbers = #tpu.dot_dimension_numbers<[2], [1], [1], [2], [0, 0, 0, 1, 1, 2], [0], [0]>} : vector<1x1x4xf32>, vector<1x4x256xf32>, vector<1x1x256xf32> -> vector<1x1x256xf32>
    "tpu.trace_stop"() : () -> ()
    %c0_5 = arith.constant 0 : index
    %6 = memref.load %arg1[%c0_5] : memref<3xf32, #tpu.memory_space<smem>>
    %c1 = arith.constant 1 : index
    %7 = memref.load %arg1[%c1] : memref<3xf32, #tpu.memory_space<smem>>
    %c2 = arith.constant 2 : index
    %8 = memref.load %arg1[%c2] : memref<3xf32, #tpu.memory_space<smem>>
    %c0_6 = arith.constant 0 : index
    %9 = memref.load %arg2[%c0_6] : memref<4xf32, #tpu.memory_space<smem>>
    %10 = vector.broadcast %9 : f32 to vector<1x1x256xf32>
    %11 = arith.mulf %10, %5 : vector<1x1x256xf32>
    %cst_7 = arith.constant 0.00999999977 : f32
    %12 = vector.broadcast %cst_7 : f32 to vector<1x1x256xf32>
    %13 = arith.cmpf ogt, %11, %12 : vector<1x1x256xf32>
    %cst_8 = arith.constant 0.000000e+00 : f32
    %14 = vector.broadcast %cst_8 : f32 to vector<1x1x256xf32>
    %15 = arith.select %13, %11, %14 : vector<1x1x256xi1>, vector<1x1x256xf32>
    %16 = vector.broadcast %6 : f32 to vector<1x1x256xf32>
    %17 = arith.mulf %16, %15 : vector<1x1x256xf32>
    %18 = math.tanh %17 : vector<1x1x256xf32>
    %19 = vector.broadcast %8 : f32 to vector<1x1x256xf32>
    %20 = arith.mulf %19, %18 : vector<1x1x256xf32>
    %21 = vector.broadcast %7 : f32 to vector<1x1x256xf32>
    %22 = arith.subf %21, %20 : vector<1x1x256xf32>
    %c0_9 = arith.constant 0 : index
    %c0_10 = arith.constant 0 : index
    %c0_11 = arith.constant 0 : index
    %23 = vector.load %arg4[%c0_9, %c0_10, %c0_11] : memref<1x4x256xf32, #tpu.memory_space<vmem>>, vector<1x1x256xf32>
    tpu.vector_store %arg4[%c0_9, %c0_10, %c0_11], %22 {strides = array<i32>} : memref<1x4x256xf32, #tpu.memory_space<vmem>>, vector<1x1x256xf32>,
    %c1_12 = arith.constant 1 : index
    %24 = memref.load %arg2[%c1_12] : memref<4xf32, #tpu.memory_space<smem>>
    %25 = vector.broadcast %24 : f32 to vector<1x1x256xf32>
    %26 = arith.mulf %25, %5 : vector<1x1x256xf32>
    %cst_13 = arith.constant 0.00999999977 : f32
    %27 = vector.broadcast %cst_13 : f32 to vector<1x1x256xf32>
    %28 = arith.cmpf ogt, %26, %27 : vector<1x1x256xf32>
    %cst_14 = arith.constant 0.000000e+00 : f32
    %29 = vector.broadcast %cst_14 : f32 to vector<1x1x256xf32>
    %30 = arith.select %28, %26, %29 : vector<1x1x256xi1>, vector<1x1x256xf32>
    %31 = vector.broadcast %6 : f32 to vector<1x1x256xf32>
    %32 = arith.mulf %31, %30 : vector<1x1x256xf32>
    %33 = math.tanh %32 : vector<1x1x256xf32>
    %34 = vector.broadcast %8 : f32 to vector<1x1x256xf32>
    %35 = arith.mulf %34, %33 : vector<1x1x256xf32>
    %36 = vector.broadcast %7 : f32 to vector<1x1x256xf32>
    %37 = arith.subf %36, %35 : vector<1x1x256xf32>
    %c0_15 = arith.constant 0 : index
    %c1_16 = arith.constant 1 : index
    %c0_17 = arith.constant 0 : index
    %38 = vector.load %arg4[%c0_15, %c1_16, %c0_17] : memref<1x4x256xf32, #tpu.memory_space<vmem>>, vector<1x1x256xf32>
    tpu.vector_store %arg4[%c0_15, %c1_16, %c0_17], %37 {strides = array<i32>} : memref<1x4x256xf32, #tpu.memory_space<vmem>>, vector<1x1x256xf32>,
    %c2_18 = arith.constant 2 : index
    %39 = memref.load %arg2[%c2_18] : memref<4xf32, #tpu.memory_space<smem>>
    %40 = vector.broadcast %39 : f32 to vector<1x1x256xf32>
    %41 = arith.mulf %40, %5 : vector<1x1x256xf32>
    %cst_19 = arith.constant 0.00999999977 : f32
    %42 = vector.broadcast %cst_19 : f32 to vector<1x1x256xf32>
    %43 = arith.cmpf ogt, %41, %42 : vector<1x1x256xf32>
    %cst_20 = arith.constant 0.000000e+00 : f32
    %44 = vector.broadcast %cst_20 : f32 to vector<1x1x256xf32>
    %45 = arith.select %43, %41, %44 : vector<1x1x256xi1>, vector<1x1x256xf32>
    %46 = vector.broadcast %6 : f32 to vector<1x1x256xf32>
    %47 = arith.mulf %46, %45 : vector<1x1x256xf32>
    %48 = math.tanh %47 : vector<1x1x256xf32>
    %49 = vector.broadcast %8 : f32 to vector<1x1x256xf32>
    %50 = arith.mulf %49, %48 : vector<1x1x256xf32>
    %51 = vector.broadcast %7 : f32 to vector<1x1x256xf32>
    %52 = arith.subf %51, %50 : vector<1x1x256xf32>
    %c0_21 = arith.constant 0 : index
    %c2_22 = arith.constant 2 : index
    %c0_23 = arith.constant 0 : index
    %53 = vector.load %arg4[%c0_21, %c2_22, %c0_23] : memref<1x4x256xf32, #tpu.memory_space<vmem>>, vector<1x1x256xf32>
    tpu.vector_store %arg4[%c0_21, %c2_22, %c0_23], %52 {strides = array<i32>} : memref<1x4x256xf32, #tpu.memory_space<vmem>>, vector<1x1x256xf32>,
    %c3 = arith.constant 3 : index
    %54 = memref.load %arg2[%c3] : memref<4xf32, #tpu.memory_space<smem>>
    %55 = vector.broadcast %54 : f32 to vector<1x1x256xf32>
    %56 = arith.mulf %55, %5 : vector<1x1x256xf32>
    %cst_24 = arith.constant 0.00999999977 : f32
    %57 = vector.broadcast %cst_24 : f32 to vector<1x1x256xf32>
    %58 = arith.cmpf ogt, %56, %57 : vector<1x1x256xf32>
    %cst_25 = arith.constant 0.000000e+00 : f32
    %59 = vector.broadcast %cst_25 : f32 to vector<1x1x256xf32>
    %60 = arith.select %58, %56, %59 : vector<1x1x256xi1>, vector<1x1x256xf32>
    %61 = vector.broadcast %6 : f32 to vector<1x1x256xf32>
    %62 = arith.mulf %61, %60 : vector<1x1x256xf32>
    %63 = math.tanh %62 : vector<1x1x256xf32>
    %64 = vector.broadcast %8 : f32 to vector<1x1x256xf32>
    %65 = arith.mulf %64, %63 : vector<1x1x256xf32>
    %66 = vector.broadcast %7 : f32 to vector<1x1x256xf32>
    %67 = arith.subf %66, %65 : vector<1x1x256xf32>
    %c0_26 = arith.constant 0 : index
    %c3_27 = arith.constant 3 : index
    %c0_28 = arith.constant 0 : index
    %68 = vector.load %arg4[%c0_26, %c3_27, %c0_28] : memref<1x4x256xf32, #tpu.memory_space<vmem>>, vector<1x1x256xf32>
    tpu.vector_store %arg4[%c0_26, %c3_27, %c0_28], %67 {strides = array<i32>} : memref<1x4x256xf32, #tpu.memory_space<vmem>>, vector<1x1x256xf32>,
    return
  }
  func.func @transform_0(%arg0: i32) -> i32 {
    %c0_i32 = arith.constant 0 : i32
    %c0_i32_0 = arith.constant 0 : i32
    return %c0_i32 : i32
  }
  func.func @transform_1(%arg0: i32) -> i32 {
    %c0_i32 = arith.constant 0 : i32
    %c0_i32_0 = arith.constant 0 : i32
    return %c0_i32 : i32
  }
  func.func @transform_2(%arg0: i32) -> (i32, i32, i32) {
    %c0_i32 = arith.constant 0 : i32
    %c0_i32_0 = arith.constant 0 : i32
    %c0_i32_1 = arith.constant 0 : i32
    return %arg0, %c0_i32, %c0_i32_0 : i32, i32, i32
  }
  func.func @transform_3(%arg0: i32) -> (i32, i32, i32) {
    %c0_i32 = arith.constant 0 : i32
    %c0_i32_0 = arith.constant 0 : i32
    %c0_i32_1 = arith.constant 0 : i32
    return %arg0, %c0_i32, %c0_i32_0 : i32, i32, i32
  }
}

</mosaic_0001>

<bundles_post_ra>
// kernel: tpu_custom_call.1
= control target key start
LH: loop header
LB: loop body
LE: loop exit
PB: predicated region body
PF: predicated region fallthrough
CT: control target
= control target key end

     0   :  { %8 = vsyncpa [#allocation5], 0  ;;  %s1090_s0 = inlined_call_operand.hbm [shape: f32[3], index: 0, kind: input, shape index: {}]   ;;  %s1091_s1 = inlined_call_operand.vmem [shape: f32[4], index: 1, kind: input, shape index: {}]   ;;  %s1092_s2 = inlined_call_operand.hbm [shape: f32[2,4,256], index: 2, kind: input, shape index: {}]   ;;  %s1093_s3 = inlined_call_operand.hbm [shape: f32[2,4,256], index: 3, kind: output, shape index: {}]  }
   0x1   :  { %9 = vsyncpa [#allocation6], 0 }
   0x2   :  { %10 = vsyncpa [#allocation3], 0 }
   0x3   :  { %12 = vsyncpa [#allocation3 + $0x1], 0 }
   0x4   :  { %13 = vsyncpa [#allocation4], 0 }
   0x5   :  { %15 = vsyncpa [#allocation4 + $0x1], 0  ;;  %s902_s12 = smov 0   ;;  %s904_s13 = smov 0  }
   0x6   :  { %s906_s14 = smov 0   ;;  %s908_s15 = smov 0  }
   0x7 LB: > { %s923_s16 = sadd.s32 4294967295, %s873_s15   ;;  %s629_s17 = sadd.s32 4294967294, %s873_s15   ;;  %s873_s15 = sphi %s908_s15, %s1119_s15   ;;  %s869_s14 = sphi %s906_s14, %s1118_s14   ;;  %s865_s13 = sphi %s904_s13, %s1117_s13   ;;  %s861_s12 = sphi %s902_s12, %s1116_s12  }
   0x8   : > { %p83_p0 = scmp.ne.s32.totalorder %s865_s13, %s861_s12  ;;  %p1094_p1 = scmp.eq.s32.totalorder %s923_s16, 0 }
   0x9   : > { %p107_p2 = scmp.eq.s32.totalorder %s923_s16, 1  ;;  %p113_p3 = scmp.eq.s32.totalorder %s629_s17, 1 }
   0xa   : > { %p932_p4 = por %p1094_p1, %p83_p0  ;;  %p630_p5 = scmp.ge.s32.totalorder %s873_s15, 1 }
   0xb   : > { %p937_p6 = por %p113_p3, %p83_p0  ;;  %p120_p7 = scmp.lt.s32.totalorder %s873_s15, 3 }
   0xc   : > { %s1098_s18 = scalar_select %p932_p4, 1, 0 }
   0xd   : > { %s1099_s19 = scalar_select %p937_p6, 1, 0 }
   0xe   : > { %p942_p8 = pnand %p630_p5, %p120_p7  ;;  %s142_s23 = sshll.u32 %s1091_s1, 4  ;;  %s143_s23 = int_to_ptr.vmem [resolvable:$true] %s142_s23 }
   0xf   : > { %s953_s24 = sadd.s32 1, %s873_s15   ;;  %s70_s27 = sadd.s32 1, %s869_s14 }
  0x10   : > { %s1100_s20 = scalar_select %p942_p8, 1, 0 }
  0x11   : > { %p672_p10 = pneg %p942_p8  ;;  %s67_s26 = ssub.s32 %s873_s15, %s953_s24 }
  0x12   : > { %p964_p12 = scmp.eq.s32.totalorder %s67_s26, 0  ;;  %s875_s29 = smov [#allocation2]  }
  0x13   : > { %p957_p11 = pnand %p672_p10, %p1094_p1  ;;  %s758_s5 = scalar_lea.vmem %s143_s23, 16 }
  0x14   : > { %p759_p13 = scmp.ne.s32.totalorder %s143_s23, %s758_s5  ;;  %p766_p7 = scmp.lt.s32.totalorder %s143_s23, %s143_s23 }
  0x15   : > { %675 = dma.hbm_to_smem (!%p957_p11), %s1090_s0, 16, %s875_s29, [#allocation5]  }
  0x16   : > { %p760_p0 = pneg %p957_p11  ;;  %p767_p10 = scmp.lt.s32.totalorder %s758_s5, %s758_s5 }
  0x18   : > { %p761_p3 = pnand %p760_p0, %p759_p13  ;;  %p768_p9 = por %p767_p10, %p766_p7 }
  0x1a   : > { %p762_p5 = pneg %p761_p3 }
  0x1c   : > { %p769_p1 = pnand %p768_p9, %p762_p5 }
  0x1e   : > { %772 = shalt.err (!%p769_p1)
}
  0x1f   : > { %s876_s6 = smov [#allocation7]   ;;  %p77_p13 = scmp.ne.s32.totalorder %s869_s14, %s865_s13 }
  0x20   : > { %678 = dma.vmem_to_smem (!%p957_p11), %s143_s23, 16, %s876_s6, [#allocation6]  }
  0x21   : > { %s980_s7 = scalar_select %p964_p12, %s869_s14, %s70_s27  }
  0x22   : > { %p78_p0 = scmp.eq.s32.totalorder %s873_s15, 0  ;;  %p689_p9 = scmp.lt.s32.totalorder %s873_s15, 2 }
  0x23   : > { %s153_s8 = sand.u32 1, %s869_s14   ;;  %p989_p3 = por %p107_p2, %p77_p13 }
  0x24   : > { %p79_p1 = por %p78_p0, %p77_p13  ;;  %s634_s10 = sshll.u32 %s153_s8, 3 }
  0x25   : > { %s1103_s9 = scalar_select %p989_p3, 1, 0 }
  0x26   : > { %s658_s11 = sshll.u32 %s873_s15, 7  ;;  %s157_s23 = scalar_lea.vmem [#allocation8], %s634_s10 }
  0x27   : > { %s997_s22 = scalar_lea.hbm %s1092_s2, %s658_s11  ;;  %s165_s25 = sshll.u32 %s157_s23, 4  ;;  %s166_s25 = int_to_ptr.vmem [resolvable:$true] %s165_s25 }
  0x28   : > { %p999_p11 = pnand %p689_p9, %p79_p1  ;;  %s154_s27 = scalar_lea.sflag [#allocation3], %s153_s8 }
  0x29   : > { %s773_s28 = scalar_lea.hbm %s997_s22, 128  ;;  %s778_s4 = scalar_lea.hbm %s1092_s2, 256 }
  0x2a   : > { %p774_p2 = scmp.ne.s32.totalorder %s997_s22, %s773_s28  ;;  %p775_p12 = pneg %p999_p11 }
  0x2b   : > { %p779_p10 = scmp.lt.s32.totalorder %s997_s22, %s1092_s2  ;;  %p780_p13 = scmp.lt.s32.totalorder %s778_s4, %s773_s28 }
  0x2c   : > { %p776_p5 = pnand %p775_p12, %p774_p2 }
  0x2d   : > { %p781_p0 = por %p780_p13, %p779_p10 }
  0x2e   : > { %p777_p7 = pneg %p776_p5 }
  0x30   : > { %p782_p9 = pnand %p781_p0, %p777_p7 }
  0x32   : > { %785 = shalt.err (!%p782_p9)
}
  0x33   : > { %s786_s10 = scalar_lea.vmem %s166_s25, 128  ;;  %s877_s8 = smov [#allocation8]  }
  0x34   : > { %p787_p1 = scmp.ne.s32.totalorder %s166_s25, %s786_s10  ;;  %s791_s11 = sshll.u32 %s877_s8, 4  ;;  %s792_s11 = int_to_ptr.vmem [resolvable:$false] %s791_s11 }
  0x35   : > { %s793_s17 = scalar_lea.vmem %s792_s11, 256  ;;  %p794_p2 = scmp.lt.s32.totalorder %s166_s25, %s792_s11 }
  0x36   : > { %p789_p6 = pnand %p787_p1, %p775_p12  ;;  %p795_p5 = scmp.lt.s32.totalorder %s793_s17, %s786_s10 }
  0x38   : > { %p790_p3 = pneg %p789_p6  ;;  %p796_p4 = por %p795_p5, %p794_p2 }
  0x3a   : > { %p797_p8 = pnand %p796_p4, %p790_p3 }
  0x3c   : > { %800 = shalt.err (!%p797_p8)
}
  0x3d   : > { %682 = dma.hbm_to_vmem [thread:$0]  (!%p999_p11), %s997_s22, 128, %s166_s25, %s154_s27  }
  0x3e   : > { %p1105_p7 = scmp.ne.s32.totalorder %s1100_s20, 0 }
  0x3f   : > { %p1106_p10 = scmp.eq.s32.totalorder (!%p1105_p7), %s923_s16, 0 }
  0x40   : > { %174 = sbr.rel (%p1105_p7) target bundleno = 525 (0x20d), region = 32 }
  0x45   : > { %844 = dma.done.wait (%p1106_p10), [#allocation5], 16   ;;  %p1107_p6 = pmov %p1106_p10 }
  0x47   : > { %846 = vsyncadd (%p1107_p6), [#allocation5], 4294967280  ;;  %p1108_p12 = pmov %p1107_p6 }
  0x48   : > { %p1109_p13 = pmov %p1107_p6 }
  0x49   : > { %848 = dma.done.wait (%p1108_p12), [#allocation6], 16  }
  0x4a   : > { %850 = vsyncadd (%p1109_p13), [#allocation6], 4294967280  ;;  %s1028_s21 = sand.u32 1, %s865_s13   ;;  %p1110_p4 = scmp.ne.s32.totalorder %s1098_s18, 0 }
  0x4b   : > { %s640_s20 = sshll.u32 %s1028_s21, 3  ;;  %s185_s22 = scalar_lea.sflag [#allocation3], %s1028_s21 }
  0x4c   : > { %s188_s23 = scalar_lea.vmem [#allocation8], %s640_s20 }
  0x4d   : > { %852 = dma.done.wait (%p1110_p4), %s185_s22, 128  }
  0x4e   : > { %854 = vsyncadd (%p1110_p4), %s185_s22, 4294967168 }
  0x4f   : > { %193 = sfence }
  0x50   : > { %v212_v0 = vld [vmem:[%s188_s23] sm:$0xff]  ;;  %v878_v2 = vmov 1.0   ;;  %vm291_vm0 = vcmask 1043456   ;;  %v879_v3 = vmov 0.0   ;;  %vm287_vm1 = vcmask 31744   ;;  %s370_s18 = sld [smem:[#allocation7]] }
  0x51   : > { %v214_v1 = vcombine.high %v212_v0, %v212_v0  ;;  %280 = vmatprep.mubr.f32.mxu0 %v878_v2  ;;  %360 = vmatprep.mubr.f32.mxu1 %v879_v3  ;;  %s647_s25 = sld [smem:[#allocation7 + $0x1]]  ;;  %v880_v38 = vmov 1966171168   ;;  %v395_v40 = vlaneseq  ;;  %s211_s4 = scalar_lea.vmem [#allocation9], %s640_s20 }
  0x52   : > { %s649_s26 = sld [smem:[#allocation7 + $0x2]]  ;;  %v393_v39 = vunpack.c.l.s4 %v880_v38  ;;  %s659_s5 = sshll.u32 %s923_s16, 7 }
  0x53   : > { %246 = vmatprep.subr.mxu0 %v214_v1  ;;  %642 = vmatprep.subr.msk.mxu1 %vm291_vm0, %v214_v1  ;;  %s1038_s27 = sld [smem:[#allocation7 + $0x3]]  ;;  %v396_v46 = vshrl.u32 %v395_v40, 7  ;;  %vm1041_vm10 = vcmp.lt.s32.totalorder %v395_v40, 256  ;;  %s535_s6 = sshll.u32 %s211_s4, 4  ;;  %s536_s6 = int_to_ptr.vmem [resolvable:$true] %s535_s6 }
  0x54   : > { %247 = vmatpush1.xpose.msra.mxu0 %v212_v0  ;;  %643 = vmatpush1.msk.msra.mxu1 %vm291_vm0, %v212_v0  ;;  %s367_s28 = sld [smem:[#allocation2]]  ;;  %v394_v45 = vunpack.c.0.s8 %v393_v39  ;;  %s533_s11 = scalar_lea.hbm %s1093_s3, %s659_s5 }
  0x55   : > { %s646_s29 = sld [smem:[#allocation2 + $0x2]]  ;;  %s521_s17 = scalar_lea.sflag [#allocation4], %s1028_s21 }
  0x56   : > { %v371_v7 = vstv %s370_s18  ;;  %s645_s30 = sld [smem:[#allocation2 + $0x1]]  ;;  %v397_v58 = vsub.s32 %v394_v45, %v396_v46  ;;  %s801_s16 = scalar_lea.vmem %s536_s6, 128 }
  0x57   : > { %281 = vmatmul.mubr.f32.vlgmr.msra.gmra.mxu0 %v878_v2  ;;  %v413_v8 = vstv %s647_s25  ;;  %p802_p8 = scmp.ne.s32.totalorder %s536_s6, %s801_s16  ;;  %p1113_p3 = scmp.ne.s32.totalorder %s1103_s9, 0 }
  0x58   : > { %v449_v9 = vstv %s649_s26  ;;  %s881_s20 = smov [#allocation9]  }
  0x59   : > { %v485_v10 = vstv %s1038_s27  ;;  %p803_p11 = pnand %p802_p8, %p1113_p3  ;;  %s805_s22 = sshll.u32 %s881_s20, 4  ;;  %s806_s22 = int_to_ptr.vmem [resolvable:$false] %s805_s22 }
  0x5a   : > { %v378_v16 = vstv %s367_s28  ;;  %s807_s23 = scalar_lea.vmem %s806_s22, 256  ;;  %p808_p9 = scmp.lt.s32.totalorder %s536_s6, %s806_s22 }
  0x5b   : > { %v383_v41 = vstv %s646_s29  ;;  %p804_p0 = pneg %p803_p11  ;;  %p809_p1 = scmp.lt.s32.totalorder %s807_s23, %s801_s16 }
  0x5c   : > { %v386_v49 = vstv %s645_s30 }
  0x5d   : > { %p810_p2 = por %p809_p1, %p808_p9 }
  0x5f   : > { %p811_p5 = pnand %p810_p2, %p804_p0 }
 0x117   : > { %v282_v4 = vpop.f32.mrf.mxu0 }
 0x118   : > { %v286_v5 = vmul.f32 0.0009765625, %v282_v4 }
 0x119   : > { %v284_v6 = vpop.f32.mrf.mxu0 }
 0x11a   : > { %644 = vmatmul.mubr.msk.f32.vlgmr.msra.gmra.mxu1 %vm287_vm1, %v286_v5 }
 0x1da   : > { %v362_v11 = vpop.f32.mrf.mxu1 }
 0x1db   : > { %v372_v12 = vmul.f32 %v371_v7, %v362_v11  ;;  %v414_v13 = vmul.f32 %v413_v8, %v362_v11  ;;  %v450_v14 = vmul.f32 %v449_v9, %v362_v11  ;;  %v486_v17 = vmul.f32 %v485_v10, %v362_v11 }
 0x1dc   : > { %v364_v15 = vpop.f32.mrf.mxu1 }
 0x1dd   : > { %v373_v18 = vmul.f32 %v371_v7, %v364_v15  ;;  %vm374_vm2 = vcmp.gt.f32.partialorder %v372_v12, 0.01  ;;  %v415_v19 = vmul.f32 %v413_v8, %v364_v15  ;;  %vm416_vm3 = vcmp.gt.f32.partialorder %v414_v13, 0.01 }
 0x1de   : > { %v376_v20 = vsel %vm374_vm2, %v372_v12, 0.0  ;;  %v418_v21 = vsel %vm416_vm3, %v414_v13, 0.0  ;;  %v451_v22 = vmul.f32 %v449_v9, %v364_v15  ;;  %vm452_vm4 = vcmp.gt.f32.partialorder %v450_v14, 0.01 }
 0x1df   : > { %vm375_vm5 = vcmp.gt.f32.partialorder %v373_v18, 0.01  ;;  %v379_v23 = vmul.f32 %v378_v16, %v376_v20  ;;  %vm417_vm6 = vcmp.gt.f32.partialorder %v415_v19, 0.01  ;;  %v420_v24 = vmul.f32 %v418_v21, %v378_v16 }
 0x1e0   : > { %v377_v25 = vsel %vm375_vm5, %v373_v18, 0.0  ;;  %v419_v26 = vsel %vm417_vm6, %v415_v19, 0.0  ;;  %vm453_vm7 = vcmp.gt.f32.partialorder %v451_v22, 0.01  ;;  %v454_v27 = vsel %vm452_vm4, %v450_v14, 0.0 }
 0x1e1   : > { %v380_v28 = vmul.f32 %v378_v16, %v377_v25  ;;  %731 = vtanh.f32 %v379_v23  ;;  %v421_v29 = vmul.f32 %v419_v26, %v378_v16  ;;  %v455_v30 = vsel %vm453_vm7, %v451_v22, 0.0 }
 0x1e2   : > { %733 = vtanh.f32 %v420_v24  ;;  %v456_v31 = vmul.f32 %v454_v27, %v378_v16  ;;  %v457_v32 = vmul.f32 %v455_v30, %v378_v16  ;;  %v487_v33 = vmul.f32 %v485_v10, %v364_v15 }
 0x1e3   : > { %735 = vtanh.f32 %v380_v28  ;;  %vm488_vm8 = vcmp.gt.f32.partialorder %v486_v17, 0.01 }
 0x1e4   : > { %737 = vtanh.f32 %v421_v29  ;;  %vm489_vm9 = vcmp.gt.f32.partialorder %v487_v33, 0.01  ;;  %v490_v34 = vsel %vm488_vm8, %v486_v17, 0.0 }
 0x1e5   : > { %739 = vtanh.f32 %v456_v31  ;;  %v491_v35 = vsel %vm489_vm9, %v487_v33, 0.0  ;;  %v492_v36 = vmul.f32 %v490_v34, %v378_v16 }
 0x1e6   : > { %741 = vtanh.f32 %v457_v32  ;;  %v493_v37 = vmul.f32 %v491_v35, %v378_v16 }
 0x1e7   : > { %743 = vtanh.f32 %v492_v36 }
 0x1e8   : > { %745 = vtanh.f32 %v493_v37 }
 0x1ee   : > { %v732_v42 = vpop.eup %731 }
 0x1ef   : > { %v734_v43 = vpop.eup %733  ;;  %v384_v44 = vmul.f32 %v732_v42, %v383_v41 }
 0x1f0   : > { %v736_v47 = vpop.eup %735  ;;  %v424_v48 = vmul.f32 %v734_v43, %v383_v41 }
 0x1f1   : > { %v738_v50 = vpop.eup %737  ;;  %v385_v51 = vmul.f32 %v736_v47, %v383_v41  ;;  %v387_v56 = vsub.f32 %v386_v49, %v384_v44 }
 0x1f2   : > { %v740_v52 = vpop.eup %739  ;;  %v425_v53 = vmul.f32 %v738_v50, %v383_v41  ;;  %v426_v61 = vsub.f32 %v386_v49, %v424_v48 }
 0x1f3   : > { %v742_v54 = vpop.eup %741  ;;  %v460_v55 = vmul.f32 %v740_v52, %v383_v41  ;;  %v388_v57 = vsub.f32 %v386_v49, %v385_v51 }
 0x1f4   : > { %v744_v59 = vpop.eup %743  ;;  %v461_v60 = vmul.f32 %v742_v54, %v383_v41  ;;  %v427_v62 = vsub.f32 %v386_v49, %v425_v53 }
 0x1f5   : > { %v746_v63 = vpop.eup %745  ;;  %v496_v0 = vmul.f32 %v744_v59, %v383_v41  ;;  %v391_v1 = vcombine.low %v387_v56, %v388_v57  ;;  %v462_v4 = vsub.f32 %v386_v49, %v460_v55 }
 0x1f6   : > { %v497_v2 = vmul.f32 %v746_v63, %v383_v41  ;;  %v430_v3 = vcombine.low %v426_v61, %v427_v62  ;;  %v463_v5 = vsub.f32 %v386_v49, %v461_v60 }
 0x1f7   : > { %v398_v6 = vrot.slane %v391_v1, %v397_v58  ;;  %v498_v10 = vsub.f32 %v386_v49, %v496_v0 }
 0x1f8   : > { %v437_v8 = vrot.slane %v430_v3, %v397_v58  ;;  %v466_v9 = vcombine.low %v462_v4, %v463_v5  ;;  %v499_v11 = vsub.f32 %v386_v49, %v497_v2 }
 0x1f9   : > { %v405_v12 = vrot.slane %v398_v6, %v397_v58 }
 0x1fa   : > { %v444_v13 = vrot.slane %v437_v8, %v397_v58  ;;  %v473_v14 = vrot.slane %v466_v9, %v397_v58  ;;  %v502_v15 = vcombine.low %v498_v10, %v499_v11 }
 0x1fb   : > { %411 = vst.msk [vmem:[%s211_s4] ss:$4 sm:$0x3] %vm1041_vm10, %v405_v12 }
 0x1fc   : > { %648 = vst.msk [vmem:[%s211_s4 + $0x1] ss:$4 sm:$0x3] %vm1041_vm10, %v444_v13  ;;  %v480_v16 = vrot.slane %v473_v14, %v397_v58  ;;  %v509_v17 = vrot.slane %v502_v15, %v397_v58 }
 0x1fe   : > { %650 = vst.msk [vmem:[%s211_s4 + $0x2] ss:$4 sm:$0x3] %vm1041_vm10, %v480_v16  ;;  %v516_v18 = vrot.slane %v509_v17, %v397_v58 }
 0x200   : > { %652 = vst.msk [vmem:[%s211_s4 + $0x3] ss:$4 sm:$0x3] %vm1041_vm10, %v516_v18 }
 0x201   : > { %814 = shalt.err (!%p811_p5)
}
 0x202   : > { %s815_s18 = scalar_lea.hbm %s533_s11, 128  ;;  %s819_s26 = scalar_lea.hbm %s1093_s3, 256 }
 0x203   : > { %p816_p7 = scmp.ne.s32.totalorder %s533_s11, %s815_s18  ;;  %p820_p12 = scmp.lt.s32.totalorder %s533_s11, %s1093_s3 }
 0x204   : > { %p821_p13 = scmp.lt.s32.totalorder %s819_s26, %s815_s18 }
 0x205   : > { %p817_p10 = pnand %p816_p7, %p1113_p3 }
 0x206   : > { %p822_p4 = por %p821_p13, %p820_p12 }
 0x207   : > { %p818_p6 = pneg %p817_p10 }
 0x209   : > { %p823_p8 = pnand %p822_p4, %p818_p6 }
 0x20b   : > { %826 = shalt.err (!%p823_p8)
}
 0x20c   : > { %670 = dma.vmem_to_hbm [thread:$0]  (%p1113_p3), %s536_s6, 128, %s533_s11, %s521_s17  }
 0x20d PF: > { %s547_s29 = sand.u32 1, %s861_s12   ;;  %p1114_p11 = scmp.ne.s32.totalorder %s1099_s19, 0 }
 0x20e   : > { %p1115_p0 = scmp.ge.s32.totalorder %s873_s15, 2  ;;  %s548_s30 = scalar_lea.sflag [#allocation4], %s547_s29 }
 0x210   : > { %p684_p9 = pnand %p1115_p0, %p1114_p11 }
 0x212   : > { %p685_p1 = pneg %p684_p9 }
 0x214   : > { %856 = dma.done.wait (%p685_p1), %s548_s30, 128  }
 0x215   : > { %858 = vsyncadd (%p685_p1), %s548_s30, 4294967168  ;;  %p18_p2 = scmp.ge.s32.totalorder %s953_s24, 4   ;;  %s1116_s12 = smov %s865_s13 }
 0x216   : > { %s1117_s13 = smov %s869_s14  ;;  %s1118_s14 = smov %s980_s7 }
 0x217   : > { %s1119_s15 = smov %s953_s24  ;;  %20 = sbr.rel (!%p18_p2) target bundleno = 7 (0x7), region = 90 }
 0x21c   :  { %553 = vsyncpa [#allocation3], 1 }
 0x21d   :  { %555 = vsyncpa [#allocation3 + $0x1], 1 }
 0x21e   :  { %556 = vsyncpa [#allocation4], 1 }
 0x21f   :  { %558 = vsyncpa [#allocation4 + $0x1], 1 }
 0x220   :  { %559 = vsyncpa [#allocation5], 1 }
 0x221   :  { %561 = vsyncpa [#allocation5 + $0x1], 1 }
 0x222   :  { %562 = vsyncpa [#allocation6], 1 }
 0x223   :  { %564 = vsyncpa [#allocation6 + $0x1], 1 }

</bundles_post_ra>
